<compile_context>
chip_gen: v5e
topology: v5e:2x2
jax: 0.10.0
libtpu: 0.0.40
codegen_flags: <defaults>
</compile_context>

<pallas_src>
import functools

import jax
import jax.numpy as jnp
from jax import lax
from jax.experimental import pallas as pl
from jax.experimental.pallas import tpu as pltpu


_CHUNK = 1024   # rows per inner compute step (bounds (chunk, K) temporaries)


def _round_up(x, m):
    return ((x + m - 1) // m) * m


def _lane_bytes(dp):
    # f32 rows in VMEM are lane-padded to a multiple of 128 lanes.
    return _round_up(dp, 128) * 4


def _physical_vmem_bytes():
    try:
        info = pltpu.get_tpu_info()
        cap = getattr(info, "vmem_capacity_bytes", None)
        if cap:
            return int(cap)
    except Exception:
        pass
    return 64 * 1024 * 1024   # conservative (v7x per-TensorCore VMEM)


def _stream_tiling(n, dp, chunk):
    """Pick (tile_rows, grid_n, n_pad, vmem_limit) for the streaming kernel."""
    phys = _physical_vmem_bytes()
    if phys >= 100 * 1024 * 1024:          # v5e / v6e: 128 MiB physical VMEM
        tile_budget, vmem_limit = 32 << 20, 96 << 20
    else:                                   # v7x: 64 MiB per TensorCore
        tile_budget, vmem_limit = 16 << 20, 48 << 20
    chunk_bytes = chunk * _lane_bytes(dp)   # VMEM (lane-padded) footprint
    max_chunks_per_tile = max(1, tile_budget // chunk_bytes)
    total_chunks = -(-n // chunk)
    grid_n = -(-total_chunks // max_chunks_per_tile)
    chunks_per_tile = -(-total_chunks // grid_n)
    tile_rows = chunks_per_tile * chunk
    n_pad = grid_n * tile_rows
    return tile_rows, grid_n, n_pad, vmem_limit


def _pad_data(data, n_pad):
    """[x | 1] for real rows, all-zero rows (incl. ones col) for padding."""
    n, d = data.shape
    data_p = jnp.concatenate(
        [data.astype(jnp.float32), jnp.ones((n, 1), jnp.float32)], axis=1)
    if n_pad > n:
        data_p = jnp.concatenate(
            [data_p, jnp.zeros((n_pad - n, d + 1), jnp.float32)], axis=0)
    return data_p


def _assign_and_accumulate(x, means_p, m2, k, dp, sums):
    """One chunk of Lloyd accumulation: returns sums + onehot^T @ [x | 1]."""
    cross = lax.dot_general(x, means_p, (((1,), (1,)), ((), ())),
                            preferred_element_type=jnp.float32)   # (chunk, K)
    # Relative squared distance ||m||^2 - 2<x, m> (per-point ||x||^2 dropped).
    dist = m2 - 2.0 * cross
    chunk = x.shape[0]
    col = lax.broadcasted_iota(jnp.int32, (chunk, k), 1)
    min_d = jnp.min(dist, axis=1, keepdims=True)
    # argmin with first-index tie break (matches torch.argmin / jnp.argmin).
    label = jnp.min(jnp.where(dist <= min_d, col, k), axis=1, keepdims=True)
    onehot = (col == label).astype(jnp.float32)                   # (chunk, K)
    # onehot^T @ [x | 1]: feature sums in cols [:D], counts in col D.
    # Padded rows are all-zero so they contribute exactly 0.
    return sums + lax.dot_general(onehot, x, (((0,), (0,)), ((), ())),
                                  preferred_element_type=jnp.float32)


def _new_means_and_delta(sums, means_p, k, dp):
    d = dp - 1
    counts = sums[:, d:dp]                                        # (K, 1)
    lane = lax.broadcasted_iota(jnp.int32, (k, dp), 1)
    # Empty clusters keep their previous mean (matches the PyTorch loop over
    # set(labels), which never touches unused cluster ids).  The ones-column
    # is re-zeroed so the padded means can feed the next iteration directly.
    means_new = jnp.where(counts > 0.0, sums / jnp.maximum(counts, 1.0),
                          means_p)
    means_new = jnp.where(lane < d, means_new, 0.0)
    diff = means_p - means_new
    delta = jnp.max(jnp.sum(diff * diff, axis=1, keepdims=True))
    return means_new, delta


# ----------------------------------------------------------------------------
# Fused kernel: whole convergence loop in one pallas_call, data resident in
# VMEM across Lloyd iterations (grid axis = iterations).
# ----------------------------------------------------------------------------
def _kmeans_fused_kernel(data_hbm, means0_ref, thresh_ref,
                         means_out_ref, delta_out_ref,
                         data_vmem, means_sc, delta_sc, copy_sem, *, chunk):
    it = pl.program_id(0)
    n_iters = pl.num_programs(0)
    n_pad, dp = data_vmem.shape
    k = means_sc.shape[0]
    n_chunks = n_pad // chunk

    threshold = thresh_ref[0, 0]

    @pl.when(it == 0)
    def _init():
        # One HBM -> VMEM DMA for the whole (padded) dataset; it stays
        # resident for every Lloyd iteration.
        cp = pltpu.make_async_copy(data_hbm, data_vmem, copy_sem)
        cp.start()
        cp.wait()
        means_sc[...] = means0_ref[...]
        delta_sc[0] = threshold + 1.0          # PyTorch: delta = threshold + 1

    @pl.when(delta_sc[0] > threshold)          # converged steps are ~free
    def _lloyd_iteration():
        means_p = means_sc[...]                # (K, D+1), last column == 0
        m2 = lax.dot_general(jnp.ones((1, dp), jnp.float32), means_p * means_p,
                             (((1,), (1,)), ((), ())),
                             preferred_element_type=jnp.float32)   # (1, K)

        def chunk_body(c, sums):
            start = pl.multiple_of(c * chunk, 8)
            x = data_vmem[pl.ds(start, chunk), :]                  # (chunk, D+1)
            return _assign_and_accumulate(x, means_p, m2, k, dp, sums)

        sums = lax.fori_loop(0, n_chunks, chunk_body,
                             jnp.zeros((k, dp), jnp.float32))
        means_new, delta = _new_means_and_delta(sums, means_p, k, dp)
        means_sc[...] = means_new
        delta_sc[0] = delta

    @pl.when(it == n_iters - 1)
    def _finalize():
        means_out_ref[...] = means_sc[...]
        delta_out_ref[0, 0] = delta_sc[0]


def _kmeans_fit_fused(data, means_init, threshold, max_iters):
    data = data.astype(jnp.float32)
    n, d = data.shape
    k = means_init.shape[0]
    dp = d + 1
    chunk = min(_CHUNK, _round_up(n, 8))
    n_pad = _round_up(n, chunk)
    data_p = _pad_data(data, n_pad)
    means_p0 = jnp.pad(means_init.astype(jnp.float32), ((0, 0), (0, 1)))
    thresh = jnp.reshape(jnp.asarray(threshold, jnp.float32), (1, 1))

    phys = _physical_vmem_bytes()
    resident_bytes = n_pad * _lane_bytes(dp)
    vmem_limit = int(min(phys - (16 << 20),
                         max(48 << 20, resident_bytes + (24 << 20))))

    kernel = functools.partial(_kmeans_fused_kernel, chunk=chunk)
    means_p, delta = pl.pallas_call(
        kernel,
        out_shape=(jax.ShapeDtypeStruct((k, dp), jnp.float32),
                   jax.ShapeDtypeStruct((1, 1), jnp.float32)),
        grid=(int(max_iters),),
        in_specs=[pl.BlockSpec(memory_space=pl.ANY),               # data (HBM)
                  pl.BlockSpec((k, dp), lambda it: (0, 0)),        # init means
                  pl.BlockSpec((1, 1), lambda it: (0, 0),
                               memory_space=pltpu.MemorySpace.SMEM)],
        out_specs=(pl.BlockSpec((k, dp), lambda it: (0, 0)),
                   pl.BlockSpec((1, 1), lambda it: (0, 0),
                                memory_space=pltpu.MemorySpace.SMEM)),
        scratch_shapes=[pltpu.VMEM((n_pad, dp), jnp.float32),      # resident data
                        pltpu.VMEM((k, dp), jnp.float32),          # current means
                        pltpu.SMEM((1,), jnp.float32),             # current delta
                        pltpu.SemaphoreType.DMA(())],
        compiler_params=pltpu.CompilerParams(
            dimension_semantics=("arbitrary",),
            vmem_limit_bytes=vmem_limit),
    )(data_p, means_p0, thresh)
    return means_p[:, :d], delta[0, 0]


_kmeans_fit_fused_jit = jax.jit(_kmeans_fit_fused, static_argnums=(3,))


# ----------------------------------------------------------------------------
# Streaming kernel: one Lloyd iteration per pallas_call, big HBM tiles over N,
# inner fori over 1024-row chunks, accumulator across grid steps.
# ----------------------------------------------------------------------------
def _kmeans_step_kernel(data_ref, means_ref, means_new_ref, delta_ref, sums_acc,
                        *, chunk):
    i = pl.program_id(0)
    n_steps = pl.num_programs(0)

    means_p = means_ref[...]                  # (K, D+1), last column == 0
    k, dp = means_p.shape
    tile_rows = data_ref.shape[0]
    n_chunks = tile_rows // chunk

    @pl.when(i == 0)
    def _init():
        sums_acc[...] = jnp.zeros_like(sums_acc)

    # ||m_j||^2 as a (1, K) row; tiny vs the tile compute.
    m2 = lax.dot_general(jnp.ones((1, dp), jnp.float32), means_p * means_p,
                         (((1,), (1,)), ((), ())),
                         preferred_element_type=jnp.float32)

    def chunk_body(c, sums):
        start = pl.multiple_of(c * chunk, 8)
        x = data_ref[pl.ds(start, chunk), :]                       # (chunk, D+1)
        return _assign_and_accumulate(x, means_p, m2, k, dp, sums)

    partial_sums = lax.fori_loop(0, n_chunks, chunk_body,
                                 jnp.zeros((k, dp), jnp.float32))
    sums_acc[...] += partial_sums

    @pl.when(i == n_steps - 1)
    def _finalize():
        means_new, delta = _new_means_and_delta(sums_acc[...], means_p, k, dp)
        means_new_ref[...] = means_new
        delta_ref[0, 0] = delta


def _kmeans_step_padded(data_p, means_p, *, tile_rows, chunk, vmem_limit):
    n_pad, dp = data_p.shape
    k = means_p.shape[0]
    grid_n = n_pad // tile_rows
    kernel = functools.partial(_kmeans_step_kernel, chunk=chunk)
    return pl.pallas_call(
        kernel,
        out_shape=(jax.ShapeDtypeStruct((k, dp), jnp.float32),
                   jax.ShapeDtypeStruct((1, 1), jnp.float32)),
        grid_spec=pltpu.PrefetchScalarGridSpec(
            num_scalar_prefetch=0,
            grid=(grid_n,),
            in_specs=[pl.BlockSpec((tile_rows, dp), lambda i: (i, 0)),
                      pl.BlockSpec((k, dp), lambda i: (0, 0))],
            out_specs=(pl.BlockSpec((k, dp), lambda i: (0, 0)),
                       pl.BlockSpec((1, 1), lambda i: (0, 0),
                                    memory_space=pltpu.MemorySpace.SMEM)),
            scratch_shapes=[pltpu.VMEM((k, dp), jnp.float32)]),    # sums+counts
        compiler_params=pltpu.CompilerParams(
            dimension_semantics=("arbitrary",),
            vmem_limit_bytes=int(vmem_limit)),
    )(data_p, means_p)


def kmeans_step(data, means, *, chunk=None, tile_rows=None):
    """One Lloyd iteration via the streaming kernel. Returns (means_new, delta)."""
    data = jnp.asarray(data, jnp.float32)
    means = jnp.asarray(means, jnp.float32)
    n, d = data.shape
    dp = d + 1
    if chunk is None:
        chunk = min(_CHUNK, _round_up(n, 8))
    assert chunk % 8 == 0
    auto_tile, _, _, vmem_limit = _stream_tiling(n, dp, chunk)
    if tile_rows is None:
        tile_rows = auto_tile
    assert tile_rows % chunk == 0
    n_pad = _round_up(n, tile_rows)
    data_p = _pad_data(data, n_pad)
    means_p = jnp.pad(means, ((0, 0), (0, 1)))
    means_new_p, delta = _kmeans_step_padded(
        data_p, means_p, tile_rows=tile_rows, chunk=chunk, vmem_limit=vmem_limit)
    return means_new_p[:, :d], delta


def _kmeans_fit_streaming(data, means_init, threshold, max_iters):
    data = data.astype(jnp.float32)
    n, d = data.shape
    dp = d + 1
    chunk = min(_CHUNK, _round_up(n, 8))
    tile_rows, _, n_pad, vmem_limit = _stream_tiling(n, dp, chunk)
    data_p = _pad_data(data, n_pad)           # padded ONCE, reused per iteration
    means_p0 = jnp.pad(means_init.astype(jnp.float32), ((0, 0), (0, 1)))
    threshold = jnp.asarray(threshold, jnp.float32)

    def cond(state):
        _, delta, it = state
        return jnp.logical_and(delta > threshold, it < max_iters)

    def body(state):
        means_p, _, it = state
        means_new_p, delta = _kmeans_step_padded(
            data_p, means_p, tile_rows=tile_rows, chunk=chunk,
            vmem_limit=vmem_limit)
        return means_new_p, delta[0, 0], it + 1

    state0 = (means_p0, threshold + 1.0, jnp.int32(0))
    means_p, delta, _ = lax.while_loop(cond, body, state0)
    return means_p[:, :d], delta


_kmeans_fit_streaming_jit = jax.jit(_kmeans_fit_streaming, static_argnums=(3,))


def k_means_forward(data, k, threshold=1.0, key=None, max_iters=100):
    """Reproduces K_means(k).forward(Data, threshold) from the PyTorch module.

    torch.randn(k, D) init is reproduced deterministically from a JAX PRNG key.
    The convergence loop runs on-device: fully inside one pallas_call (data
    resident in VMEM) when the dataset fits, else as a lax.while_loop around
    the streaming kernel.  max_iters is a safety cap (the PyTorch loop has no
    cap and could hang on a non-converging init).
    """
    if key is None:
        key = jax.random.PRNGKey(0)
    data = jnp.asarray(data, jnp.float32)
    n, d = data.shape
    means_init = jax.random.normal(key, (k, d), dtype=jnp.float32)

    phys = _physical_vmem_bytes()
    chunk = min(_CHUNK, _round_up(n, 8))
    resident_bytes = _round_up(n, chunk) * _lane_bytes(d + 1)
    if resident_bytes <= phys - (32 << 20):
        means, _ = _kmeans_fit_fused_jit(data, means_init,
                                         jnp.float32(threshold), int(max_iters))
    else:
        means, _ = _kmeans_fit_streaming_jit(data, means_init,
                                             jnp.float32(threshold),
                                             int(max_iters))
    return means


def _kmeans_step_ref(data, means):
    """Pure-JAX reference for one Lloyd iteration (same relative distance)."""
    hp = lax.Precision.HIGHEST
    cross = jnp.einsum('nd,kd->nk', data, means, precision=hp)
    m2 = jnp.sum(means * means, axis=1)[None, :]
    dist = m2 - 2.0 * cross
    labels = jnp.argmin(dist, axis=1)
    onehot = jax.nn.one_hot(labels, means.shape[0], dtype=jnp.float32)
    sums = jnp.einsum('nk,nd->kd', onehot, data, precision=hp)
    counts = jnp.sum(onehot, axis=0)[:, None]
    means_new = jnp.where(counts > 0, sums / jnp.maximum(counts, 1.0), means)
    delta = jnp.max(jnp.sum((means - means_new) ** 2, axis=1))
    return means_new, delta


if __name__ == "__main__":
    key = jax.random.PRNGKey(0)
    key_data, key_init = jax.random.split(key)

    # End-to-end run matching the module's forward semantics (fused VMEM path).
    N, D, K = 64, 32, 8
    data = jax.random.normal(key_data, (N, D), dtype=jnp.float32)
    means = k_means_forward(data, K, threshold=1.0, key=key_init)
    means = jax.block_until_ready(means)
    assert means.shape == (K, D) and means.dtype == jnp.float32
    assert bool(jnp.all(jnp.isfinite(means)))

    # Smoke-test the streaming fit path (while_loop around the grid kernel).
    means_s, _ = _kmeans_fit_streaming_jit(
        data, jax.random.normal(key_init, (K, D), dtype=jnp.float32),
        jnp.float32(1.0), 20)
    means_s = jax.block_until_ready(means_s)
    assert means_s.shape == (K, D) and bool(jnp.all(jnp.isfinite(means_s)))

    # Single Lloyd step: streaming kernel (multi grid step + zero padding) and
    # fused kernel (max_iters=1) must both match the pure-JAX reference.
    k2, k3 = jax.random.split(jax.random.PRNGKey(1))
    data2 = jax.random.normal(k2, (200, D), dtype=jnp.float32)
    means0 = jax.random.normal(k3, (K, D), dtype=jnp.float32)
    m_ref, d_ref = _kmeans_step_ref(data2, means0)

    m_str, d_str = kmeans_step(data2, means0, chunk=64, tile_rows=64)  # grid of 4
    m_str, d_str = jax.block_until_ready((m_str, d_str))
    assert jnp.allclose(m_str, m_ref, rtol=1e-3, atol=1e-3), "streaming means"
    assert jnp.allclose(d_str[0, 0], d_ref, rtol=1e-3, atol=1e-3), "streaming delta"

    m_fus, d_fus = _kmeans_fit_fused_jit(data2, means0, jnp.float32(1.0), 1)
    m_fus, d_fus = jax.block_until_ready((m_fus, d_fus))
    assert jnp.allclose(m_fus, m_ref, rtol=1e-3, atol=1e-3), "fused means"
    assert jnp.allclose(d_fus, d_ref, rtol=1e-3, atol=1e-3), "fused delta"

    print("KERNEL_OK")
</pallas_src>

<mosaic_0001>
module attributes {stable_mosaic.version = 11 : i64} {
  func.func @_kmeans_fused_kernel(%arg0: i32, %arg1: memref<64x33xf32, #tpu.memory_space<any>>, %arg2: memref<8x33xf32, #tpu.memory_space<vmem>>, %arg3: memref<1x1xf32, #tpu.memory_space<smem>>, %arg4: memref<8x33xf32, #tpu.memory_space<vmem>>, %arg5: memref<1x1xf32, #tpu.memory_space<smem>>, %arg6: memref<64x33xf32, #tpu.memory_space<vmem>>, %arg7: memref<8x33xf32, #tpu.memory_space<vmem>>, %arg8: memref<1xf32, #tpu.memory_space<smem>>, %arg9: memref<!tpu.dma_semaphore, #tpu.memory_space<semaphore_mem>>) attributes {dimension_semantics = [#tpu.dimension_semantics<arbitrary>], iteration_bounds = array<i64: 100>, scalar_prefetch = 0 : i64, scratch_operands = 4 : i64, tpu.core_type = #tpu.core_type<tc>, window_params = [{}, {pipeline_mode = #tpu.pipeline_mode<synchronous>, transform_indices = @transform_1, window_bounds = array<i64: 8, 33>}, {transform_indices = @transform_2, window_bounds = array<i64: 1, 1>}, {pipeline_mode = #tpu.pipeline_mode<synchronous>, transform_indices = @transform_3, window_bounds = array<i64: 8, 33>}, {transform_indices = @transform_4, window_bounds = array<i64: 1, 1>}]} {
    %c0 = arith.constant 0 : index
    %c0_0 = arith.constant 0 : index
    %0 = memref.load %arg3[%c0, %c0_0] : memref<1x1xf32, #tpu.memory_space<smem>>
    %c0_i32 = arith.constant 0 : i32
    %1 = arith.cmpi eq, %arg0, %c0_i32 : i32
    %2 = arith.extui %1 : i1 to i32
    %c0_i32_1 = arith.constant 0 : i32
    %3 = arith.cmpi ne, %2, %c0_i32_1 : i32
    scf.if %3 {
      tpu.enqueue_dma source(%arg1 : memref<64x33xf32, #tpu.memory_space<any>>) target(%arg6 : memref<64x33xf32, #tpu.memory_space<vmem>>) target_semaphore(%arg9 : memref<!tpu.dma_semaphore, #tpu.memory_space<semaphore_mem>>)
      tpu.wait_dma2 semaphore(%arg9 : memref<!tpu.dma_semaphore, #tpu.memory_space<semaphore_mem>>) src(%arg1 : memref<64x33xf32, #tpu.memory_space<any>>) dst(%arg6 : memref<64x33xf32, #tpu.memory_space<vmem>>)
      %c0_5 = arith.constant 0 : index
      %c0_6 = arith.constant 0 : index
      %11 = vector.load %arg2[%c0_5, %c0_6] : memref<8x33xf32, #tpu.memory_space<vmem>>, vector<8x33xf32>
      %c0_7 = arith.constant 0 : index
      %c0_8 = arith.constant 0 : index
      %12 = vector.load %arg7[%c0_7, %c0_8] : memref<8x33xf32, #tpu.memory_space<vmem>>, vector<8x33xf32>
      tpu.vector_store %arg7[%c0_7, %c0_8], %11 {strides = array<i32>} : memref<8x33xf32, #tpu.memory_space<vmem>>, vector<8x33xf32>,
      %cst = arith.constant 1.000000e+00 : f32
      %13 = arith.addf %0, %cst : f32
      %c0_9 = arith.constant 0 : index
      %14 = memref.load %arg8[%c0_9] : memref<1xf32, #tpu.memory_space<smem>>
      memref.store %13, %arg8[%c0_9] : memref<1xf32, #tpu.memory_space<smem>>
    } else {
    }
    %c0_2 = arith.constant 0 : index
    %4 = memref.load %arg8[%c0_2] : memref<1xf32, #tpu.memory_space<smem>>
    %5 = arith.cmpf ogt, %4, %0 : f32
    %6 = arith.extui %5 : i1 to i32
    %c0_i32_3 = arith.constant 0 : i32
    %7 = arith.cmpi ne, %6, %c0_i32_3 : i32
    scf.if %7 {
      %c0_5 = arith.constant 0 : index
      %c0_6 = arith.constant 0 : index
      %11 = vector.load %arg7[%c0_5, %c0_6] : memref<8x33xf32, #tpu.memory_space<vmem>>, vector<8x33xf32>
      %cst = arith.constant 1.000000e+00 : f32
      %12 = vector.broadcast %cst : f32 to vector<1x33xf32>
      %13 = arith.mulf %11, %11 : vector<8x33xf32>
      %cst_7 = arith.constant dense<0.000000e+00> : vector<1x8xf32>
      %14 = tpu.matmul %12, %13, %cst_7 {dimension_numbers = #tpu.dot_dimension_numbers<[1], [1], [0], [0], [0, 0, 1, 0], [], []>} : vector<1x33xf32>, vector<8x33xf32>, vector<1x8xf32> -> vector<1x8xf32>
      %cst_8 = arith.constant 0.000000e+00 : f32
      %15 = vector.broadcast %cst_8 : f32 to vector<8x33xf32>
      %c0_i32_9 = arith.constant 0 : i32
      %c64_i32 = arith.constant 64 : i32
      %16 = arith.muli %c0_i32_9, %c64_i32 : i32
      %17 = tpu.assume_multiple %16, 8 : i32
      %18 = arith.index_cast %17 : i32 to index
      %c0_10 = arith.constant 0 : index
      %19 = vector.load %arg6[%18, %c0_10] : memref<64x33xf32, #tpu.memory_space<vmem>>, vector<64x33xf32>
      %cst_11 = arith.constant dense<0.000000e+00> : vector<64x8xf32>
      %20 = tpu.matmul %19, %11, %cst_11 {dimension_numbers = #tpu.dot_dimension_numbers<[1], [1], [0], [0], [0, 0, 1, 0], [], []>} : vector<64x33xf32>, vector<8x33xf32>, vector<64x8xf32> -> vector<64x8xf32>
      %cst_12 = arith.constant 2.000000e+00 : f32
      %21 = vector.broadcast %cst_12 : f32 to vector<64x8xf32>
      %22 = arith.mulf %21, %20 : vector<64x8xf32>
      %23 = vector.broadcast %14 : vector<1x8xf32> to vector<64x8xf32>
      %24 = arith.subf %23, %22 : vector<64x8xf32>
      %25 = tpu.iota {dimensions = array<i32: 1>} : vector<64x8xi32>
      %cst_13 = arith.constant dense<0x7F800000> : vector<64xf32>
      %26 = vector.multi_reduction <minimumf>, %24, %cst_13 [1] : vector<64x8xf32> to vector<64xf32>
      %27 = vector.shape_cast %26 : vector<64xf32> to vector<64x1xf32>
      %28 = vector.broadcast %27 : vector<64x1xf32> to vector<64x8xf32>
      %29 = arith.cmpf ole, %24, %28 : vector<64x8xf32>
      %c8_i32 = arith.constant 8 : i32
      %30 = vector.broadcast %c8_i32 : i32 to vector<64x8xi32>
      %31 = arith.select %29, %25, %30 : vector<64x8xi1>, vector<64x8xi32>
      %cst_14 = arith.constant dense<2147483647> : vector<64xi32>
      %32 = vector.multi_reduction <minsi>, %31, %cst_14 [1] : vector<64x8xi32> to vector<64xi32>
      %33 = vector.shape_cast %32 : vector<64xi32> to vector<64x1xi32>
      %34 = vector.broadcast %33 : vector<64x1xi32> to vector<64x8xi32>
      %35 = arith.cmpi eq, %25, %34 : vector<64x8xi32>
      %36 = arith.extui %35 : vector<64x8xi1> to vector<64x8xi32>
      %37 = arith.sitofp %36 : vector<64x8xi32> to vector<64x8xf32>
      %cst_15 = arith.constant dense<0.000000e+00> : vector<8x33xf32>
      %38 = tpu.matmul %37, %19, %cst_15 {dimension_numbers = #tpu.dot_dimension_numbers<[0], [0], [1], [1], [0, 1, 1, 1], [], []>} : vector<64x8xf32>, vector<64x33xf32>, vector<8x33xf32> -> vector<8x33xf32>
      %39 = arith.addf %15, %38 : vector<8x33xf32>
      %c1_i32 = arith.constant 1 : i32
      %40 = vector.extract_strided_slice %39 {offsets = [0, 32], sizes = [8, 1], strides = [1, 1]} : vector<8x33xf32> to vector<8x1xf32>
      %41 = tpu.iota {dimensions = array<i32: 1>} : vector<8x33xi32>
      %cst_16 = arith.constant 0.000000e+00 : f32
      %42 = vector.broadcast %cst_16 : f32 to vector<8x1xf32>
      %43 = arith.cmpf ogt, %40, %42 : vector<8x1xf32>
      %cst_17 = arith.constant 1.000000e+00 : f32
      %44 = vector.broadcast %cst_17 : f32 to vector<8x1xf32>
      %45 = arith.maximumf %40, %44 : vector<8x1xf32>
      %46 = vector.broadcast %45 : vector<8x1xf32> to vector<8x33xf32>
      %47 = arith.divf %39, %46 : vector<8x33xf32>
      %48 = vector.shape_cast %43 : vector<8x1xi1> to vector<8x1xi1>
      %49 = vector.broadcast %48 : vector<8x1xi1> to vector<8x33xi1>
      %50 = arith.select %49, %47, %11 : vector<8x33xi1>, vector<8x33xf32>
      %c32_i32 = arith.constant 32 : i32
      %51 = vector.broadcast %c32_i32 : i32 to vector<8x33xi32>
      %52 = arith.cmpi slt, %41, %51 : vector<8x33xi32>
      %cst_18 = arith.constant 0.000000e+00 : f32
      %53 = vector.broadcast %cst_18 : f32 to vector<8x33xf32>
      %54 = arith.select %52, %50, %53 : vector<8x33xi1>, vector<8x33xf32>
      %55 = arith.subf %11, %54 : vector<8x33xf32>
      %56 = arith.mulf %55, %55 : vector<8x33xf32>
      %cst_19 = arith.constant dense<0.000000e+00> : vector<8xf32>
      %57 = vector.multi_reduction <add>, %56, %cst_19 [1] : vector<8x33xf32> to vector<8xf32>
      %58 = vector.shape_cast %57 : vector<8xf32> to vector<8x1xf32>
      %59 = vector.shape_cast %58 : vector<8x1xf32> to vector<1x8x1xf32>
      %cst_20 = arith.constant dense<0xFF800000> : vector<1xf32>
      %60 = vector.multi_reduction <maximumf>, %59, %cst_20 [1, 2] : vector<1x8x1xf32> to vector<1xf32>
      %61 = vector.shape_cast %60 : vector<1xf32> to vector<1x1x1xf32>
      %62 = vector.extract %61[0, 0, 0] : f32 from vector<1x1x1xf32>
      %c0_21 = arith.constant 0 : index
      %c0_22 = arith.constant 0 : index
      %63 = vector.load %arg7[%c0_21, %c0_22] : memref<8x33xf32, #tpu.memory_space<vmem>>, vector<8x33xf32>
      tpu.vector_store %arg7[%c0_21, %c0_22], %54 {strides = array<i32>} : memref<8x33xf32, #tpu.memory_space<vmem>>, vector<8x33xf32>,
      %c0_23 = arith.constant 0 : index
      %64 = memref.load %arg8[%c0_23] : memref<1xf32, #tpu.memory_space<smem>>
      memref.store %62, %arg8[%c0_23] : memref<1xf32, #tpu.memory_space<smem>>
    } else {
    }
    %c99_i32 = arith.constant 99 : i32
    %8 = arith.cmpi eq, %arg0, %c99_i32 : i32
    %9 = arith.extui %8 : i1 to i32
    %c0_i32_4 = arith.constant 0 : i32
    %10 = arith.cmpi ne, %9, %c0_i32_4 : i32
    scf.if %10 {
      %c0_5 = arith.constant 0 : index
      %c0_6 = arith.constant 0 : index
      %11 = vector.load %arg7[%c0_5, %c0_6] : memref<8x33xf32, #tpu.memory_space<vmem>>, vector<8x33xf32>
      %c0_7 = arith.constant 0 : index
      %c0_8 = arith.constant 0 : index
      %12 = vector.load %arg4[%c0_7, %c0_8] : memref<8x33xf32, #tpu.memory_space<vmem>>, vector<8x33xf32>
      tpu.vector_store %arg4[%c0_7, %c0_8], %11 {strides = array<i32>} : memref<8x33xf32, #tpu.memory_space<vmem>>, vector<8x33xf32>,
      %c0_9 = arith.constant 0 : index
      %13 = memref.load %arg8[%c0_9] : memref<1xf32, #tpu.memory_space<smem>>
      %c0_10 = arith.constant 0 : index
      %c0_11 = arith.constant 0 : index
      %14 = memref.load %arg5[%c0_10, %c0_11] : memref<1x1xf32, #tpu.memory_space<smem>>
      memref.store %13, %arg5[%c0_10, %c0_11] : memref<1x1xf32, #tpu.memory_space<smem>>
    } else {
    }
    return
  }
  func.func @transform_1(%arg0: i32) -> (i32, i32) {
    %c0_i32 = arith.constant 0 : i32
    %c0_i32_0 = arith.constant 0 : i32
    %c0_i32_1 = arith.constant 0 : i32
    return %c0_i32, %c0_i32_0 : i32, i32
  }
  func.func @transform_2(%arg0: i32) -> (i32, i32) {
    %c0_i32 = arith.constant 0 : i32
    %c0_i32_0 = arith.constant 0 : i32
    %c0_i32_1 = arith.constant 0 : i32
    return %c0_i32, %c0_i32_0 : i32, i32
  }
  func.func @transform_3(%arg0: i32) -> (i32, i32) {
    %c0_i32 = arith.constant 0 : i32
    %c0_i32_0 = arith.constant 0 : i32
    %c0_i32_1 = arith.constant 0 : i32
    return %c0_i32, %c0_i32_0 : i32, i32
  }
  func.func @transform_4(%arg0: i32) -> (i32, i32) {
    %c0_i32 = arith.constant 0 : i32
    %c0_i32_0 = arith.constant 0 : i32
    %c0_i32_1 = arith.constant 0 : i32
    return %c0_i32, %c0_i32_0 : i32, i32
  }
}

</mosaic_0001>

<bundles_post_ra>
// kernel: _kmeans_fit_fused.1
= control target key start
LH: loop header
LB: loop body
LE: loop exit
PB: predicated region body
PF: predicated region fallthrough
CT: control target
= control target key end

     0   :  { %s993_s0 = inlined_call_operand.vmem [shape: f32[64,33], index: 0, kind: input, shape index: {}]   ;;  %s994_s1 = inlined_call_operand.vmem [shape: f32[8,33], index: 1, kind: input, shape index: {}]   ;;  %s995_s2 = inlined_call_operand.<no memory space> [shape: f32[1,1], index: 2, kind: input, shape index: {}]   ;;  %s996_s3 = inlined_call_operand.hbm [shape: f32[8,33], index: 3, kind: output, shape index: {0}]   ;;  %s997_s4 = inlined_call_operand.hbm [shape: f32[1,1], index: 4, kind: output, shape index: {1}]  }
   0x1   :  { %10 = sst [smem:[#allocation6]] %s995_s2 }
   0x2   :  { %11 = vsyncpa [#allocation8], 0 }
   0x3   :  { %12 = vsyncpa [#allocation9], 0  ;;  %s841_s17 = smov 0  }
   0x4 LB: > { %s847_s18 = sadd.s32 4294967295, %s805_s17   ;;  %p682_p0 = scmp.ge.s32.totalorder %s805_s17, 1  ;;  %s805_s17 = sphi %s841_s17, %s18_s17  }
   0x5   : > { %p124_p1 = scmp.lt.s32.totalorder %s805_s17, 101 }
   0x7   : > { %p125_p2 = pnand %p682_p0, %p124_p1 }
   0x8   : > { %s851_s19 = sld [smem:[#allocation6]] (!%p125_p2)  ;;  %p683_p3 = scmp.ne.s32.totalorder (!%p125_p2), %s847_s18, 0 }
   0x9   : > { %128 = sbr.rel (%p125_p2) target bundleno = 1192 (0x4a8), region = 28 }
   0xe   : > { %142 = sbr.rel (%p683_p3) target bundleno = 33 (0x21), region = 32 }
  0x13   : > { %v153_v0 = vld [vmem:[%s993_s0] sm:$0xff]  ;;  %v155_v1 = vld [vmem:[%s993_s0 + $0x8] sm:$0xff]  ;;  %v157_v2 = vld [vmem:[%s993_s0 + $0x10] sm:$0xff] }
  0x14   : > { %154 = vst [vmem:[#allocation2 + $0x30] sm:$0xff] %v153_v0  ;;  %v159_v3 = vld [vmem:[%s993_s0 + $0x18] sm:$0xff]  ;;  %v161_v4 = vld [vmem:[%s993_s0 + $0x20] sm:$0xff]  ;;  %v163_v5 = vld [vmem:[%s993_s0 + $0x28] sm:$0xff] }
  0x15   : > { %156 = vst [vmem:[#allocation2] sm:$0xff] %v155_v1  ;;  %v165_v6 = vld [vmem:[%s993_s0 + $0x30] sm:$0xff]  ;;  %v167_v7 = vld [vmem:[%s993_s0 + $0x38] sm:$0xff] }
  0x16   : > { %158 = vst [vmem:[#allocation2 + $0x18] sm:$0xff] %v157_v2 }
  0x17   : > { %160 = vst [vmem:[#allocation2 + $0x10] sm:$0xff] %v159_v3 }
  0x18   : > { %162 = vst [vmem:[#allocation2 + $0x8] sm:$0xff] %v161_v4 }
  0x19   : > { %164 = vst [vmem:[#allocation2 + $0x20] sm:$0xff] %v163_v5 }
  0x1a   : > { %166 = vst [vmem:[#allocation2 + $0x28] sm:$0xff] %v165_v6 }
  0x1b   : > { %168 = vst [vmem:[#allocation2 + $0x38] sm:$0xff] %v167_v7 }
  0x1c   : > { %174 = vsyncadd [#allocation5], 1024 }
  0x1d   : > { %793 = dma.done.wait [#allocation5], 1024 }
  0x1e   : > { %794 = vsyncadd [#allocation5], 4294966272  ;;  %s181_s9 = sadd.f32 1.0, %s851_s19  ;;  %vm179_vm0 = vcmask 269312   ;;  %v178_v8 = vld [vmem:[%s994_s1] sm:$0xff] }
  0x1f   : > { %180 = vst.msk [vmem:[#allocation3] sm:$0xff] %vm179_vm0, %v178_v8 }
  0x20   : > { %183 = sst [smem:[#allocation4]] %s181_s9 }
  0x21 PF: > { %s184_s12 = sld [smem:[#allocation4]] }
  0x27   : > { %p185_p4 = scmp.gt.f32.partialorder %s184_s12, %s851_s19 }
  0x28   : > { %v883_v9 = vld [vmem:[#allocation3] sm:$0xff] (%p185_p4)  ;;  %vm191_vm1 = vcmask (%p185_p4), 269312   ;;  %v220_v11 = vld [vmem:[#allocation2 + $0x18] sm:$0xff] (%p185_p4)  ;;  %v224_v14 = vld [vmem:[#allocation2 + $0x28] sm:$0xff] (%p185_p4)  ;;  %v807_v15 = vmov (%p185_p4), 1.0   ;;  %vm313_vm2 = vcmask (%p185_p4), 64512   ;;  %v311_v54 = vlaneseq (%p185_p4) }
  0x29   : > { %188 = sbr.rel (!%p185_p4) target bundleno = 1173 (0x495), region = 55  ;;  %712 = vmatpush.xpose.msk.msra.mxu1 (%p185_p4), %vm191_vm1, %v883_v9  ;;  %713 = vmatpush.xpose.msk.msra.mxu3 (%p185_p4), %vm191_vm1, %v883_v9  ;;  %v190_v10 = vmul.f32 (%p185_p4), %v883_v9, %v883_v9  ;;  %v223_v12 = vld [vmem:[#allocation2 + $0x20] sm:$0xff] (%p185_p4)  ;;  %v225_v13 = vld [vmem:[#allocation2 + $0x38] sm:$0xff] (%p185_p4)  ;;  %v222_v16 = vld [vmem:[#allocation2 + $0x8] sm:$0xff] (%p185_p4) }
  0x2a   : > { %542 = vmatpush.msra.mxu2 (%p185_p4), %v225_v13  ;;  %v221_v17 = vld [vmem:[#allocation2 + $0x10] sm:$0xff] (%p185_p4)  ;;  %v219_v19 = vld [vmem:[#allocation2] sm:$0xff] (%p185_p4)  ;;  %v911_v55 = vand.u32 (%p185_p4), 127, %v311_v54 }
  0x2b   : > { %684 = vmatpush.xpose.msk.msra.mxu0 (%p185_p4), %vm191_vm1, %v190_v10  ;;  %v218_v18 = vld [vmem:[#allocation2 + $0x30] sm:$0xff] (%p185_p4) }
  0x2c   : > { %689 = vmatmul.msk.f32.vlgmr.msra.gmra.mxu1 (%p185_p4), %vm191_vm1, %v220_v11  ;;  %692 = vmatmul.msk.f32.vlgmr.msra.gmra.mxu3 (%p185_p4), %vm191_vm1, %v223_v12 }
  0x2d   : > { %543 = vmatpush.msra.mxu2 (%p185_p4), %v224_v14 }
  0x2e   : > { %685 = vmatmul.msk.f32.vlgmr.msra.gmra.mxu0 %vm191_vm1, %v807_v15 }
  0x2f   : > { %686 = vmatpush.xpose.msk.msrb.mxu0 %vm191_vm1, %v883_v9  ;;  %544 = vmatpush.msra.mxu2 %v223_v12 }
  0x31   : > { %545 = vmatpush.msra.mxu2 %v222_v16 }
  0x33   : > { %546 = vmatpush.msra.mxu2 %v221_v17 }
  0x34   : > { %690 = vmatmul.msk.f32.gmra.mxu1 %vm191_vm1, %v221_v17  ;;  %693 = vmatmul.msk.f32.gmra.mxu3 %vm191_vm1, %v224_v14 }
  0x35   : > { %547 = vmatpush.msra.mxu2 %v220_v11 }
  0x36   : > { %687 = vmatmul.msk.f32.vlgmr.msrb.gmra.mxu0 %vm191_vm1, %v218_v18 }
  0x37   : > { %548 = vmatpush.msra.mxu2 %v219_v19 }
  0x39   : > { %549 = vmatpush.msra.mxu2 %v218_v18 }
  0x3c   : > { %691 = vmatmul.msk.f32.gmra.mxu1 %vm191_vm1, %v222_v16  ;;  %694 = vmatmul.msk.f32.gmra.mxu3 %vm191_vm1, %v225_v13 }
  0x3e   : > { %688 = vmatmul.msk.f32.gmra.mxu0 %vm191_vm1, %v219_v19 }
  0xa9   : > { %v276_v20 = vpop.f32.mrf.mxu1 }
  0xaa   : > { %v296_v22 = vmul.f32 2.0, %v276_v20 }
  0xab   : > { %v215_v21 = vpop.f32.mrf.mxu0 }
  0xac   : > { %v302_v23 = vperm.slane %v215_v21, 0 }
  0xae   : > { %v305_v24 = vsub.f32 %v302_v23, %v296_v22 }
  0xaf   : > { %v285_v25 = vpop.f32.mrf.mxu3 }
  0xb0   : > { %v320_v26 = vsel %vm313_vm2, %v305_v24, inf  ;;  %v299_v41 = vmul.f32 2.0, %v285_v25 }
  0xb1   : > { %v279_v27 = vpop.f32.mrf.mxu1  ;;  %321 = vmin.xlane.f32.xlu1 %v320_v26 }
  0xb2   : > { %v297_v28 = vmul.f32 2.0, %v279_v27  ;;  %v308_v49 = vsub.f32 %v302_v23, %v299_v41 }
  0xb3   : > { %v270_v29 = vpop.f32.mrf.mxu0 }
  0xb4   : > { %v294_v30 = vmul.f32 2.0, %v270_v29  ;;  %v306_v31 = vsub.f32 %v302_v23, %v297_v28  ;;  %v329_v52 = vsel %vm313_vm2, %v308_v49, inf }
  0xb6   : > { %v303_v32 = vsub.f32 %v302_v23, %v294_v30  ;;  %v323_v34 = vsel %vm313_vm2, %v306_v31, inf }
  0xb7   : > { %v288_v33 = vpop.f32.mrf.mxu3 }
  0xb8   : > { %v314_v35 = vsel %vm313_vm2, %v303_v32, inf  ;;  %v300_v45 = vmul.f32 2.0, %v288_v33 }
  0xb9   : > { %v282_v36 = vpop.f32.mrf.mxu1  ;;  %324 = vmin.xlane.f32.xlu1 %v323_v34  ;;  %315 = vmin.xlane.f32.xlu0 %v314_v35 }
  0xba   : > { %v298_v37 = vmul.f32 2.0, %v282_v36  ;;  %v309_v51 = vsub.f32 %v302_v23, %v300_v45 }
  0xbb   : > { %v273_v38 = vpop.f32.mrf.mxu0 }
  0xbc   : > { %v295_v39 = vmul.f32 2.0, %v273_v38  ;;  %v307_v40 = vsub.f32 %v302_v23, %v298_v37  ;;  %v332_v53 = vsel %vm313_vm2, %v309_v51, inf }
  0xbe   : > { %v304_v42 = vsub.f32 %v302_v23, %v295_v39  ;;  %v326_v43 = vsel %vm313_vm2, %v307_v40, inf }
  0xbf   : > { %v291_v44 = vpop.f32.mrf.mxu3  ;;  %327 = vmin.xlane.f32.xlu2 %v326_v43 }
  0xc0   : > { %v301_v46 = vmul.f32 2.0, %v291_v44  ;;  %v317_v47 = vsel %vm313_vm2, %v304_v42, inf }
  0xc1   : > { %318 = vmin.xlane.f32.xlu0 %v317_v47 }
  0xc2   : > { %v310_v48 = vsub.f32 %v302_v23, %v301_v46 }
  0xc4   : > { %v335_v50 = vsel %vm313_vm2, %v310_v48, inf }
  0xc5   : > { %336 = vmin.xlane.f32.xlu1 %v335_v50 }
  0xc7   : > { %330 = vmin.xlane.f32.xlu2 %v329_v52 }
  0xc9   : > { %333 = vmin.xlane.f32.xlu0 %v332_v53 }
 0x124   : > { %v322_v56 = vpop.xlane.xlu1 %321 }
 0x125   : > { %vm340_vm3 = vcmp.le.f32.partialorder %v305_v24, %v322_v56 }
 0x126   : > { %v348_v57 = vsel %vm340_vm3, %v911_v55, 8 }
 0x127   : > { %v384_v58 = vsel %vm313_vm2, %v348_v57, 2147483647 }
 0x128   : > { %v386_v59 = vshra.s32 %v384_v58, 16  ;;  %v385_v33 = vand.u32 65535, %v384_v58 }
 0x12a   : > { %v388_v60 = vcvt.s32.f32 %v386_v59  ;;  %v387_v35 = vcvt.s32.f32 %v385_v33 }
 0x12c   : > { %389 = vmin.xlane.f32.xlu1 %v388_v60  ;;  %v325_v61 = vpop.xlane.xlu1 %324  ;;  %v316_v62 = vpop.xlane.xlu0 %315 }
 0x12d   : > { %vm341_vm4 = vcmp.le.f32.partialorder %v306_v31, %v325_v61  ;;  %vm338_vm5 = vcmp.le.f32.partialorder %v303_v32, %v316_v62 }
 0x12e   : > { %v346_v63 = vsel %vm338_vm5, %v911_v55, 8  ;;  %v349_v1 = vsel %vm341_vm4, %v911_v55, 8 }
 0x12f   : > { %v354_v0 = vsel %vm313_vm2, %v346_v63, 2147483647  ;;  %v399_v5 = vsel %vm313_vm2, %v349_v1, 2147483647 }
 0x130   : > { %v356_v2 = vshra.s32 %v354_v0, 16  ;;  %v401_v12 = vshra.s32 %v399_v5, 16  ;;  %v355_v37 = vand.u32 65535, %v354_v0  ;;  %v400_v41 = vand.u32 65535, %v399_v5 }
 0x132   : > { %v328_v3 = vpop.xlane.xlu2 %327  ;;  %v358_v4 = vcvt.s32.f32 %v356_v2  ;;  %v403_v17 = vcvt.s32.f32 %v401_v12  ;;  %v357_v39 = vcvt.s32.f32 %v355_v37  ;;  %v402_v44 = vcvt.s32.f32 %v400_v41 }
 0x133   : > { %vm342_vm6 = vcmp.le.f32.partialorder %v307_v40, %v328_v3 }
 0x134   : > { %v350_v6 = vsel %vm342_vm6, %v911_v55, 8  ;;  %359 = vmin.xlane.f32.xlu2 %v358_v4  ;;  %v319_v7 = vpop.xlane.xlu0 %318 }
 0x135   : > { %v921_v8 = vsel %vm313_vm2, %v350_v6, 2147483647  ;;  %vm339_vm7 = vcmp.le.f32.partialorder %v304_v42, %v319_v7  ;;  %v808_v7 = vmov 0.0  }
 0x136   : > { %v347_v10 = vsel %vm339_vm7, %v911_v55, 8  ;;  %v416_v11 = vshra.s32 %v921_v8, 16  ;;  %v415_v59 = vand.u32 65535, %v921_v8 }
 0x137   : > { %v369_v15 = vsel %vm313_vm2, %v347_v10, 2147483647 }
 0x138   : > { %v337_v13 = vpop.xlane.xlu1 %336  ;;  %v925_v14 = vcvt.s32.f32 %v416_v11  ;;  %v371_v20 = vshra.s32 %v369_v15, 16  ;;  %v370_v47 = vand.u32 65535, %v369_v15 }
 0x139   : > { %vm345_vm8 = vcmp.le.f32.partialorder %v310_v48, %v337_v13 }
 0x13a   : > { %v331_v16 = vpop.xlane.xlu2 %330  ;;  %419 = vmin.xlane.f32.xlu0 %v925_v14  ;;  %v353_v22 = vsel %vm345_vm8, %v911_v55, 8  ;;  %v373_v27 = vcvt.s32.f32 %v371_v20  ;;  %v372_v52 = vcvt.s32.f32 %v370_v47 }
 0x13b   : > { %vm343_vm9 = vcmp.le.f32.partialorder %v308_v49, %v331_v16  ;;  %v459_v29 = vsel %vm313_vm2, %v353_v22, 2147483647 }
 0x13c   : > { %v351_v18 = vsel %vm343_vm9, %v911_v55, 8  ;;  %404 = vmin.xlane.f32.xlu2 %v403_v17  ;;  %v334_v19 = vpop.xlane.xlu0 %333  ;;  %v461_v31 = vshra.s32 %v459_v29, 16  ;;  %v460_v63 = vand.u32 65535, %v459_v29 }
 0x13d   : > { %v429_v21 = vsel %vm313_vm2, %v351_v18, 2147483647  ;;  %vm344_vm10 = vcmp.le.f32.partialorder %v309_v51, %v334_v19 }
 0x13e   : > { %v352_v23 = vsel %vm344_vm10, %v911_v55, 8  ;;  %v431_v24 = vshra.s32 %v429_v21, 16  ;;  %v463_v32 = vcvt.s32.f32 %v461_v31  ;;  %v430_v46 = vand.u32 65535, %v429_v21 }
 0x13f   : > { %v444_v25 = vsel %vm313_vm2, %v352_v23, 2147483647  ;;  %v462_v0 = vcvt.s32.f32 %v460_v63 }
 0x140   : > { %v433_v26 = vcvt.s32.f32 %v431_v24  ;;  %v446_v28 = vshra.s32 %v444_v25, 16  ;;  %v445_v48 = vand.u32 65535, %v444_v25  ;;  %v432_v51 = vcvt.s32.f32 %v430_v46 }
 0x142   : > { %434 = vmin.xlane.f32.xlu1 %v433_v26  ;;  %374 = vmin.xlane.f32.xlu0 %v373_v27  ;;  %v448_v30 = vcvt.s32.f32 %v446_v28  ;;  %v447_v57 = vcvt.s32.f32 %v445_v48 }
 0x144   : > { %449 = vmin.xlane.f32.xlu2 %v448_v30 }
 0x14a   : > { %464 = vmin.xlane.f32.xlu0 %v463_v32 }
 0x19f   : > { %v935_v34 = vpop.xlane.xlu1 %389 }
 0x1a0   : > { %vm391_vm11 = vcmp.eq.f32.partialorder %v388_v60, %v935_v34  ;;  %v417_v60 = vcvt.s32.f32 %v415_v59  ;;  %v396_v13 = vcvt.f32.s32 %v935_v34 }
 0x1a1   : > { %v392_v36 = vsel %vm391_vm11, %v387_v35, inf }
 0x1a2   : > { %393 = vmin.xlane.f32.xlu0 %v392_v36  ;;  %v397_v18 = vshll.u32 %v396_v13, 16 }
 0x1a7   : > { %v360_v38 = vpop.xlane.xlu2 %359 }
 0x1a8   : > { %vm361_vm12 = vcmp.eq.f32.partialorder %v358_v4, %v360_v38  ;;  %v366_v2 = vcvt.f32.s32 %v360_v38 }
 0x1a9   : > { %v362_v40 = vsel %vm361_vm12, %v357_v39, inf  ;;  %vm530_vm12 = vcmask 523264  }
 0x1aa   : > { %363 = vmin.xlane.f32.xlu1 %v362_v40  ;;  %v367_v4 = vshll.u32 %v366_v2, 16 }
 0x1ad   : > { %v938_v42 = vpop.xlane.xlu0 %419 }
 0x1ae   : > { %vm421_vm2 = vcmp.eq.f32.partialorder %v925_v14, %v938_v42  ;;  %v426_v28 = vcvt.f32.s32 %v938_v42 }
 0x1af   : > { %v405_v43 = vpop.xlane.xlu2 %404  ;;  %v422_v61 = vsel %vm421_vm2, %v417_v60, inf }
 0x1b0   : > { %vm406_vm13 = vcmp.eq.f32.partialorder %v403_v17, %v405_v43  ;;  %v411_v22 = vcvt.f32.s32 %v405_v43 }
 0x1b1   : > { %v407_v45 = vsel %vm406_vm13, %v402_v44, inf }
 0x1b2   : > { %408 = vmin.xlane.f32.xlu1 %v407_v45  ;;  %v412_v24 = vshll.u32 %v411_v22, 16 }
 0x1b5   : > { %v940_v49 = vpop.xlane.xlu1 %434  ;;  %v375_v50 = vpop.xlane.xlu0 %374 }
 0x1b6   : > { %vm436_vm14 = vcmp.eq.f32.partialorder %v433_v26, %v940_v49  ;;  %vm376_vm15 = vcmp.eq.f32.partialorder %v373_v27, %v375_v50  ;;  %v381_v10 = vcvt.f32.s32 %v375_v50  ;;  %v441_v34 = vcvt.f32.s32 %v940_v49 }
 0x1b7   : > { %v943_v53 = vpop.xlane.xlu2 %449  ;;  %v437_v54 = vsel %vm436_vm14, %v432_v51, inf  ;;  %v377_v56 = vsel %vm376_vm15, %v372_v52, inf }
 0x1b8   : > { %438 = vmin.xlane.f32.xlu0 %v437_v54  ;;  %378 = vmin.xlane.f32.xlu2 %v377_v56  ;;  %vm451_vm0 = vcmp.eq.f32.partialorder %v448_v30, %v943_v53  ;;  %v382_v14 = vshll.u32 %v381_v10, 16  ;;  %v427_v30 = vshll.u32 %v426_v28, 16  ;;  %v442_v36 = vshll.u32 %v441_v34, 16 }
 0x1b9   : > { %v452_v58 = vsel %vm451_vm0, %v447_v57, inf  ;;  %v456_v40 = vcvt.f32.s32 %v943_v53  ;;  %v809_v53 = vmov 32   ;;  %v810_v57 = vmov 0  }
 0x1ba   : > { %453 = vmin.xlane.f32.xlu1 %v452_v58  ;;  %743 = vset.pattern.permute.xlu2 %v809_v53 }
 0x1bb   : > { %v457_v42 = vshll.u32 %v456_v40, 16  ;;  %742 = vset.pattern.permute.xlu1 %v809_v53 }
 0x1bd   : > { %v949_v62 = vpop.xlane.xlu0 %464 }
 0x1be   : > { %vm466_vm3 = vcmp.eq.f32.partialorder %v463_v32, %v949_v62  ;;  %v471_v46 = vcvt.f32.s32 %v949_v62 }
 0x1bf   : > { %v467_v1 = vsel %vm466_vm3, %v462_v0, inf  ;;  %vm582_vm3 = vcmp.lt.s32.totalorder %v911_v55, 32 }
 0x1c0   : > { %423 = vmin.xlane.f32.xlu2 %v422_v61  ;;  %v472_v48 = vshll.u32 %v471_v46, 16 }
 0x1c8   : > { %468 = vmin.xlane.f32.xlu2 %v467_v1 }
 0x215   : > { %v394_v11 = vpop.xlane.xlu0 %393 }
 0x216   : > { %v395_v16 = vcvt.f32.s32 %v394_v11 }
 0x218   : > { %v398_v20 = vadd.s32 %v397_v18, %v395_v16 }
 0x21a   : > { %vm476_vm6 = vcmp.eq.s32.totalorder %v911_v55, %v398_v20 }
 0x21b   : > { %v697_v25 = vsel %vm476_vm6, 1.0, %v808_v7 }
 0x21d   : > { %v364_v3 = vpop.xlane.xlu1 %363 }
 0x21e   : > { %v365_v5 = vcvt.f32.s32 %v364_v3 }
 0x220   : > { %v368_v6 = vadd.s32 %v367_v4, %v365_v5 }
 0x222   : > { %vm474_vm4 = vcmp.eq.s32.totalorder %v911_v55, %v368_v6 }
 0x223   : > { %v695_v8 = vsel %vm474_vm4, 1.0, %v808_v7 }
 0x224   : > { %498 = vxpose.xlu0.b32.start [1/8] (short) (narrow) %v695_v8, 8 }
 0x225   : > { %v409_v21 = vpop.xlane.xlu1 %408 }
 0x226   : > { %v410_v23 = vcvt.f32.s32 %v409_v21 }
 0x228   : > { %v413_v26 = vadd.s32 %v412_v24, %v410_v23 }
 0x22a   : > { %vm477_vm7 = vcmp.eq.s32.totalorder %v911_v55, %v413_v26 }
 0x22b   : > { %v379_v12 = vpop.xlane.xlu2 %378  ;;  %v698_v31 = vsel %vm477_vm7, 1.0, %v808_v7  ;;  %v439_v33 = vpop.xlane.xlu0 %438 }
 0x22c   : > { %v380_v15 = vcvt.f32.s32 %v379_v12  ;;  %v440_v35 = vcvt.f32.s32 %v439_v33 }
 0x22d   : > { %v454_v39 = vpop.xlane.xlu1 %453 }
 0x22e   : > { %v383_v17 = vadd.s32 %v382_v14, %v380_v15  ;;  %v443_v38 = vadd.s32 %v442_v36, %v440_v35  ;;  %v455_v41 = vcvt.f32.s32 %v454_v39 }
 0x230   : > { %vm475_vm5 = vcmp.eq.s32.totalorder %v911_v55, %v383_v17  ;;  %vm479_vm9 = vcmp.eq.s32.totalorder %v911_v55, %v443_v38  ;;  %v458_v44 = vadd.s32 %v457_v42, %v455_v41 }
 0x231   : > { %v696_v19 = vsel %vm475_vm5, 1.0, %v808_v7  ;;  %v700_v43 = vsel %vm479_vm9, 1.0, %v808_v7 }
 0x232   : > { %499 = vxpose.xlu0.b32.cont [2/8] (short) (narrow) %v696_v19, 8  ;;  %vm480_vm10 = vcmp.eq.s32.totalorder %v911_v55, %v458_v44 }
 0x233   : > { %v424_v27 = vpop.xlane.xlu2 %423  ;;  %v701_v49 = vsel %vm480_vm10, 1.0, %v808_v7 }
 0x234   : > { %v425_v29 = vcvt.f32.s32 %v424_v27 }
 0x236   : > { %v428_v32 = vadd.s32 %v427_v30, %v425_v29 }
 0x238   : > { %vm478_vm8 = vcmp.eq.s32.totalorder %v911_v55, %v428_v32 }
 0x239   : > { %v699_v37 = vsel %vm478_vm8, 1.0, %v808_v7 }
 0x23a   : > { %500 = vxpose.xlu0.b32.cont [3/8] (short) (narrow) %v697_v25, 8 }
 0x23b   : > { %v469_v45 = vpop.xlane.xlu2 %468 }
 0x23c   : > { %v470_v47 = vcvt.f32.s32 %v469_v45 }
 0x23e   : > { %v473_v50 = vadd.s32 %v472_v48, %v470_v47 }
 0x240   : > { %vm481_vm11 = vcmp.eq.s32.totalorder %v911_v55, %v473_v50 }
 0x241   : > { %v702_v51 = vsel %vm481_vm11, 1.0, %v808_v7 }
 0x242   : > { %501 = vxpose.xlu0.b32.cont [4/8] (short) (narrow) %v698_v31, 8 }
 0x24a   : > { %502 = vxpose.xlu0.b32.cont [5/8] (short) (narrow) %v699_v37, 8 }
 0x252   : > { %503 = vxpose.xlu0.b32.cont [6/8] (short) (narrow) %v700_v43, 8 }
 0x25a   : > { %504 = vxpose.xlu0.b32.cont [7/8] (short) (narrow) %v701_v49, 8 }
 0x262   : > { %505 = vxpose.xlu0.b32.end [8/8] (short) (narrow) %v702_v51, 8 }
 0x2c9   : > { %744 = vset.pattern.permute.xlu0 %v809_v53 }
 0x2ce   : > { %v514_v52 = vpop.trf.xlu0 }
 0x2cf   : > { %703 = vmatmul.msk.f32.vlgmr.msra.gmra.mxu2 %vm530_vm12, %v514_v52 }
 0x352   : > { %v551_v54 = vpop.f32.mrf.mxu2 }
 0x353   : > { %vm554_vm13 = vcmp.gt.f32.partialorder %v551_v54, 0.0  ;;  %v555_v56 = vmax.f32 %v551_v54, 1.0 }
 0x354   : > { %v576_v58 = vsel %vm554_vm13, 1, %v810_v57 }
 0x355   : > { %558 = vperm.xlu1 %742, %v555_v56   ;;  %578 = vperm.xlu2 %743, %v576_v58  }
 0x3af   : > { %v579_v4 = vpop.permute.xlu2 %578 }
 0x3b0   : > { %vm580_vm4 = vcmp.eq.s32.totalorder %v579_v4, 1 }
 0x3c7   : > { %v559_v59 = vpop.permute.xlu1 %558 }
 0x3c8   : > { %745 = vrcp.f32 %v559_v59  ;;  %v572_v63 = vand.u32 2147483648, %v559_v59  ;;  %v570_v1 = vand.u32 2147483647, %v559_v59  ;;  %vm566_vm15 = vweird.f32 %v559_v59 }
 0x3ca   : > { %v573_v3 = vor.u32 1.1754944e-38, %v572_v63  ;;  %vm571_vm2 = vcmp.eq.f32.partialorder %v570_v1, 8.507059e+37 }
 0x3ce   : > { %v746_v60 = vpop.eup %745 }
 0x3cf   : > { %v562_v61 = vmul.f32 %v746_v60, %v559_v59  ;;  %vm567_vm14 = vweird.f32 %v746_v60 }
 0x3d0   : > { %vm568_vm0 = vmor %vm566_vm15, %vm567_vm14 }
 0x3d1   : > { %v563_v62 = vsub.f32 1.0, %v562_v61 }
 0x3d3   : > { %v564_v0 = vmul.f32 %v746_v60, %v563_v62 }
 0x3d5   : > { %v565_v2 = vadd.f32 %v746_v60, %v564_v0 }
 0x3d7   : > { %v569_v5 = vsel %vm568_vm0, %v746_v60, %v565_v2 }
 0x3d8   : > { %v574_v6 = vsel %vm571_vm2, %v573_v3, %v569_v5 }
 0x3d9   : > { %v575_v7 = vmul.f32 %v574_v6, %v551_v54 }
 0x3db   : > { %v581_v8 = vsel %vm580_vm4, %v575_v7, %v883_v9 }
 0x3dc   : > { %v583_v10 = vsel %vm582_vm3, %v581_v8, 0.0 }
 0x3dd   : > { %v584_v11 = vsub.f32 %v883_v9, %v583_v10  ;;  %596 = vst.msk [vmem:[#allocation3] sm:$0xff] %vm191_vm1, %v583_v10 }
 0x3df   : > { %v585_v12 = vmul.f32 %v584_v11, %v584_v11 }
 0x3e1   : > { %v586_v13 = vsel %vm191_vm1, %v585_v12, 0.0 }
 0x3e2   : > { %587 = vadd.xlane.f32.xlu2 %v586_v13 }
 0x455   : > { %v588_v14 = vpop.xlane.xlu2 %587 }
 0x456   : > { %v589_v15 = vrot.slane %v588_v14, 4 }
 0x458   : > { %v590_v16 = vmax.f32 %v588_v14, %v589_v15 }
 0x45a   : > { %v591_v17 = vrot.slane %v590_v16, 2 }
 0x45c   : > { %v592_v18 = vmax.f32 %v590_v16, %v591_v17 }
 0x45e   : > { %v593_v19 = vrot.slane %v592_v18, 1 }
 0x460   : > { %v594_v20 = vmax.f32 %v592_v18, %v593_v19 }
 0x462   : > { %714 = vpush %v594_v20 }
 0x493   : > { %s715_s13 = spop %714 }
 0x494   : > { %598 = sst [smem:[#allocation4]] %s715_s13 }
 0x495 PF: > { %p704_p5 = scmp.ne.s32.totalorder %s847_s18, 99 }
 0x496   : > { %s606_s14 = sld [smem:[#allocation4]] (!%p704_p5) }
 0x497   : > { %602 = sbr.rel (%p704_p5) target bundleno = 1182 (0x49e), region = 59 }
 0x49c   : > { %v603_v9 = vld [vmem:[#allocation3] sm:$0xff]  ;;  %vm604_vm5 = vcmask 269312   ;;  %608 = sst [smem:[#allocation10]] %s606_s14 }
 0x49d   : > { %605 = vst.msk [vmem:[#allocation7] sm:$0xff] %vm604_vm5, %v603_v9 }
 0x49e PF: > { %p724_p6 = scmp.eq.s32.totalorder %s847_s18, 99  ;;  %s811_s15 = smov [#allocation7]  }
 0x49f   : > { %s615_s16 = sshll.u32 %s811_s15, 4  ;;  %s617_s20 = sshll.u32 %s996_s3, 4  ;;  %s616_s16 = int_to_ptr.vmem [resolvable:$true] %s615_s16  ;;  %s618_s20 = int_to_ptr.hbm [resolvable:$true] %s617_s20 }
 0x4a0   : > { %717 = dma.vmem_to_hbm [thread:$0]  (%p724_p6), %s616_s16, 128, %s618_s20, [#allocation8]  }
 0x4a1   : > { %s627_s23 = sshll.u32 %s997_s4, 4  ;;  %s812_s24 = smov [#allocation10]   ;;  %s628_s23 = int_to_ptr.hbm [resolvable:$true] %s627_s23 }
 0x4a2   : > { %719 = dma.smem_to_hbm (%p724_p6), %s812_s24, 16, %s628_s23, [#allocation9]  }
 0x4a3   : > { %796 = dma.done.wait (%p724_p6), [#allocation8], 128  }
 0x4a4   : > { %798 = vsyncadd (%p724_p6), [#allocation8], 4294967168 }
 0x4a5   : > { %800 = dma.done.wait (%p724_p6), [#allocation9], 16  }
 0x4a6   : > { %802 = vsyncadd (%p724_p6), [#allocation9], 4294967280 }
 0x4a7   : > { %641 = sfence }
 0x4a8 PF: > { %s18_s17 = sadd.s32 1, %s805_s17  }
 0x4a9   : > { %p15_p7 = scmp.ge.s32.totalorder %s18_s17, 102  }
 0x4ab   :  { %17 = sbr.rel (!%p15_p7) target bundleno = 4 (0x4), region = 99 }
 0x4b0   :  { %647 = vsyncpa [#allocation8], 1 }
 0x4b1   :  { %649 = vsyncpa [#allocation8 + $0x1], 1 }
 0x4b2   :  { %650 = vsyncpa [#allocation9], 1 }
 0x4b3   :  { %652 = vsyncpa [#allocation9 + $0x1], 1 }
 0x4b4   :  { %653 = vsyncmov [#allocation5] }
 0x4b7   :  { %s654_s25 = vpop.sfrf %653 }
 0x4b8   :  { %p711_p8 = scmp.ne.s32.totalorder %s654_s25, 0 }
 0x4ba   :  { %658 = shalt.err (%p711_p8)  }

</bundles_post_ra>
